<compile_context>
chip_gen: v7x
topology: tpu7x:2x2x1
jax: 0.10.0
libtpu: 0.0.40
codegen_flags: <defaults>
</compile_context>

<pallas_src>
import functools
import math

import jax
import jax.numpy as jnp
from jax import lax
from jax.experimental import pallas as pl
from jax.experimental.pallas import tpu as pltpu


# MXU input dtype. bf16 is MXU-native on v5e/v6e/v7x; accumulation is always
# f32 via preferred_element_type.
MATMUL_DTYPE = jnp.bfloat16
LN_EPS = 1e-6   # matches nn.LayerNorm(model_dim, eps=1e-06) in the reference


def _pick_tile(dim, target, align):
    """Largest tile <= target that is a multiple of `align` and divides `dim`
    (falls back to the full dim, which is always a legal block)."""
    if dim <= target:
        return dim
    t = (target // align) * align
    while t >= align:
        if dim % t == 0:
            return t
        t -= align
    return dim


@functools.lru_cache(maxsize=None)
def _vmem_limit_bytes():
    """Per-generation scoped VMEM limit: ~75% of physical, capped at 100 MiB
    (=> ~96 MiB on v5e/v6e with 128 MiB VMEM, ~48 MiB on v7x with 64 MiB)."""
    try:
        cap = int(pltpu.get_tpu_info().vmem_capacity_bytes)
        if cap <= 0:
            cap = 64 << 20
    except Exception:
        cap = 64 << 20
    return max(16 << 20, min(int(cap * 0.75), 100 << 20))


def _compiler_params(dimension_semantics):
    return pltpu.CompilerParams(dimension_semantics=dimension_semantics,
                                vmem_limit_bytes=_vmem_limit_bytes())


# ----------------------------------------------------------------------------
# Tiled linear:  y = x @ W + b  (optional ReLU)
# ----------------------------------------------------------------------------
def _linear_kernel(x_ref, w_ref, b_ref, o_ref, acc_ref, *, relu):
    @pl.when(pl.program_id(2) == 0)
    def _():
        acc_ref[...] = jnp.zeros_like(acc_ref)

    acc_ref[...] += jnp.dot(x_ref[...].astype(MATMUL_DTYPE),
                            w_ref[...].astype(MATMUL_DTYPE),
                            preferred_element_type=jnp.float32)

    @pl.when(pl.program_id(2) == pl.num_programs(2) - 1)
    def _():
        y = acc_ref[...] + b_ref[...]
        if relu:
            y = jnp.maximum(y, 0.0)
        o_ref[...] = y.astype(o_ref.dtype)


def linear(x2d, w, b, relu=False):
    """x2d: (M, K) f32, w: (K, N) bf16, b: (N,) f32 -> (M, N) f32."""
    M, K = x2d.shape
    N = w.shape[1]
    # Activations stay f32 (sublane align 8); weight tiles are multiples of
    # 128 so bf16 sublane packing (16) is automatically satisfied.
    tm = _pick_tile(M, 512, 8)
    tn = _pick_tile(N, 512, 128)
    tk = _pick_tile(K, 512, 128)
    kern = functools.partial(_linear_kernel, relu=relu)
    return pl.pallas_call(
        kern,
        out_shape=jax.ShapeDtypeStruct((M, N), x2d.dtype),
        grid=(M // tm, N // tn, K // tk),
        in_specs=[
            pl.BlockSpec((tm, tk), lambda i, j, k: (i, k)),
            pl.BlockSpec((tk, tn), lambda i, j, k: (k, j)),
            pl.BlockSpec((1, tn), lambda i, j, k: (0, j)),
        ],
        out_specs=pl.BlockSpec((tm, tn), lambda i, j, k: (i, j)),
        scratch_shapes=[pltpu.VMEM((tm, tn), jnp.float32)],
        compiler_params=_compiler_params(("parallel", "parallel", "arbitrary")),
    )(x2d, w, b.reshape(1, N))


# ----------------------------------------------------------------------------
# Fused attention block:
#   LayerNorm( (softmax(q k^T + bias) v) @ Wo + bo + residual )
# One (batch, Tq-tile) per grid step; all heads handled inside the kernel.
# The 1/sqrt(head_dim) scale is already folded into Wq, so no q scaling here.
# ----------------------------------------------------------------------------
def _attn_block_kernel(*refs, num_heads, mask_kind, eps):
    if mask_kind == "tensor":
        (q_ref, k_ref, v_ref, m_ref, res_ref,
         wo_ref, bo_ref, g_ref, be_ref, o_ref, attn_sc) = refs
    else:
        (q_ref, k_ref, v_ref, res_ref,
         wo_ref, bo_ref, g_ref, be_ref, o_ref, attn_sc) = refs
        m_ref = None

    D = q_ref.shape[2]
    Tk = k_ref.shape[1]
    Dh = D // num_heads

    q = q_ref[0].astype(MATMUL_DTYPE)          # (tq, D); scale folded into Wq
    k = k_ref[0].astype(MATMUL_DTYPE)          # (Tk, D)
    v = v_ref[0].astype(MATMUL_DTYPE)          # (Tk, D)
    tq = q.shape[0]

    # Additive mask bias (tq, Tk), computed once per grid step.
    if mask_kind == "causal":
        row = (pl.program_id(1) * tq
               + lax.broadcasted_iota(jnp.int32, (tq, Tk), 0))
        col = lax.broadcasted_iota(jnp.int32, (tq, Tk), 1)
        bias = jnp.where(col > row, jnp.float32(-1e9), jnp.float32(0.0))
    elif mask_kind == "tensor":
        bias = m_ref[0].astype(jnp.float32) * jnp.float32(-1e9)
    else:
        bias = None

    # TODO(synk): for long Tk convert this to an online-softmax (flash)
    # formulation with a Tk grid axis so the (tq, Tk) scores are never
    # materialized at full sequence length.
    # TODO(synk): if num_heads grows beyond ~8, restructure this static unroll
    # into lax.fori_loop(..., unroll=True) to bound live ranges.
    for h in range(num_heads):                      # static unroll over heads
        lo, hi = h * Dh, (h + 1) * Dh
        s = lax.dot_general(q[:, lo:hi], k[:, lo:hi], (((1,), (1,)), ((), ())),
                            preferred_element_type=jnp.float32)   # (tq, Tk)
        if bias is not None:
            s = s + bias
        s = s - jnp.max(s, axis=-1, keepdims=True)
        p = jnp.exp(s)
        p = p * pl.reciprocal(jnp.sum(p, axis=-1, keepdims=True), approx=True)
        # Head output goes into lanes [lo:hi] of the (tq, D) scratch; the
        # head-concat is thus free and the out-projection below runs with
        # full contraction depth K=D instead of K=Dh.
        attn_sc[:, lo:hi] = jnp.dot(p.astype(MATMUL_DTYPE), v[:, lo:hi],
                                    preferred_element_type=jnp.float32)

    acc = (res_ref[0].astype(jnp.float32) + bo_ref[...]
           + jnp.dot(attn_sc[...].astype(MATMUL_DTYPE),
                     wo_ref[...].astype(MATMUL_DTYPE),
                     preferred_element_type=jnp.float32))

    # LayerNorm over the model dim.
    mu = jnp.mean(acc, axis=-1, keepdims=True)
    xc = acc - mu
    var = jnp.mean(xc * xc, axis=-1, keepdims=True)
    y = xc * lax.rsqrt(var + eps)
    o_ref[0] = (y * g_ref[...] + be_ref[...]).astype(o_ref.dtype)


def attn_block(q_src, q_col, kv_src, k_col, v_col, mask, causal, residual,
               wo, bo, gamma, beta, num_heads, eps=LN_EPS):
    """Fused MHA + out-proj + residual + LayerNorm.

    q_src holds the query projection in lane-column block `q_col` (width D);
    kv_src holds K at column block `k_col` and V at `v_col`, so the fused
    QKV / KV projection outputs are consumed directly (no XLA slice/transpose
    between pallas_calls).  `causal=True` generates the look-ahead mask
    in-kernel; otherwise an optional mask tensor (1 = masked) is used.
    """
    N, Tq, D = residual.shape
    Tk = kv_src.shape[1]
    tq = _pick_tile(Tq, 256, 8)

    mask_kind = "causal" if causal else ("tensor" if mask is not None else "none")

    in_specs = [
        pl.BlockSpec((1, tq, D), lambda b, qi: (b, qi, q_col)),
        pl.BlockSpec((1, Tk, D), lambda b, qi: (b, 0, k_col)),
        pl.BlockSpec((1, Tk, D), lambda b, qi: (b, 0, v_col)),
    ]
    args = [q_src, kv_src, kv_src]

    if mask_kind == "tensor":
        m = mask
        if m.ndim == 4:                 # (N, 1|H, 1|Tq, Tk) -> drop head dim
            m = m[:, 0]
        if m.ndim == 2:                 # (Tq, Tk) -> (1, Tq, Tk)
            m = m[None]
        m = jnp.broadcast_to(m, (m.shape[0], Tq, Tk))
        if m.shape[0] == 1:
            in_specs.append(pl.BlockSpec((1, tq, Tk), lambda b, qi: (0, qi, 0)))
        else:
            in_specs.append(pl.BlockSpec((1, tq, Tk), lambda b, qi: (b, qi, 0)))
        args.append(m)

    in_specs += [
        pl.BlockSpec((1, tq, D), lambda b, qi: (b, qi, 0)),   # residual
        pl.BlockSpec((D, D), lambda b, qi: (0, 0)),           # Wo (bf16)
        pl.BlockSpec((1, D), lambda b, qi: (0, 0)),           # bo
        pl.BlockSpec((1, D), lambda b, qi: (0, 0)),           # gamma
        pl.BlockSpec((1, D), lambda b, qi: (0, 0)),           # beta
    ]
    args += [residual, wo, bo.reshape(1, D),
             gamma.reshape(1, D), beta.reshape(1, D)]

    kern = functools.partial(_attn_block_kernel, num_heads=num_heads,
                             mask_kind=mask_kind, eps=eps)
    return pl.pallas_call(
        kern,
        out_shape=jax.ShapeDtypeStruct((N, Tq, D), residual.dtype),
        grid=(N, Tq // tq),
        in_specs=in_specs,
        out_specs=pl.BlockSpec((1, tq, D), lambda b, qi: (b, qi, 0)),
        scratch_shapes=[pltpu.VMEM((tq, D), jnp.float32)],
        compiler_params=_compiler_params(("parallel", "parallel")),
    )(*args)


# ----------------------------------------------------------------------------
# Fused FFN block:  LayerNorm( relu(x @ W1 + b1) @ W2 + b2 + x )
# The (tm, FF) hidden activation stays in VMEM/vregs — never written to HBM.
# ----------------------------------------------------------------------------
def _ffn_block_kernel(x_ref, w1_ref, b1_ref, w2_ref, b2_ref, g_ref, be_ref,
                      o_ref, *, eps):
    x = x_ref[...]
    h = jnp.dot(x.astype(MATMUL_DTYPE), w1_ref[...].astype(MATMUL_DTYPE),
                preferred_element_type=jnp.float32) + b1_ref[...]
    h = jnp.maximum(h, 0.0)
    y = jnp.dot(h.astype(MATMUL_DTYPE), w2_ref[...].astype(MATMUL_DTYPE),
                preferred_element_type=jnp.float32) + b2_ref[...]
    y = y + x.astype(jnp.float32)                    # residual
    mu = jnp.mean(y, axis=-1, keepdims=True)
    yc = y - mu
    var = jnp.mean(yc * yc, axis=-1, keepdims=True)
    out = yc * lax.rsqrt(var + eps)
    o_ref[...] = (out * g_ref[...] + be_ref[...]).astype(o_ref.dtype)


def ffn_block(x2d, w1, b1, w2, b2, gamma, beta, eps=LN_EPS):
    """x2d: (M, D) f32 -> (M, D) f32.  Tiled over M (parallel)."""
    M, D = x2d.shape
    FF = w1.shape[1]
    tm = _pick_tile(M, 512, 8)
    # TODO(synk): for large D/FF (v7x 64 MiB VMEM), K/N-tile the two matmuls
    # (reduction grid axis or pltpu.emit_pipeline) instead of holding the full
    # bf16 W1/W2 blocks in VMEM, and single-buffer them via pl.Buffered(1).
    kern = functools.partial(_ffn_block_kernel, eps=eps)
    return pl.pallas_call(
        kern,
        out_shape=jax.ShapeDtypeStruct((M, D), x2d.dtype),
        grid=(M // tm,),
        in_specs=[
            pl.BlockSpec((tm, D), lambda i: (i, 0)),
            pl.BlockSpec((D, FF), lambda i: (0, 0)),
            pl.BlockSpec((1, FF), lambda i: (0, 0)),
            pl.BlockSpec((FF, D), lambda i: (0, 0)),
            pl.BlockSpec((1, D), lambda i: (0, 0)),
            pl.BlockSpec((1, D), lambda i: (0, 0)),
            pl.BlockSpec((1, D), lambda i: (0, 0)),
        ],
        out_specs=pl.BlockSpec((tm, D), lambda i: (i, 0)),
        compiler_params=_compiler_params(("parallel",)),
    )(x2d, w1, b1.reshape(1, FF), w2, b2.reshape(1, D),
      gamma.reshape(1, D), beta.reshape(1, D))


# ----------------------------------------------------------------------------
# DecoderBlock forward (6 pallas_calls)
# ----------------------------------------------------------------------------
def decoder_block(params, x, enc_output, look_ahead_mask=None,
                  padding_mask=None, causal_self_attention=False):
    """params must be the *prepared* params (bf16 weights, scale folded into
    Wq) from prepare_decoder_params().  Dropout layers are identity at
    inference.  If causal_self_attention=True, the look-ahead mask is
    generated in-kernel and look_ahead_mask is ignored."""
    N, T, D = x.shape
    Te = enc_output.shape[1]
    H = params["num_heads"]

    # 1) masked self-attention: fused QKV matmul + fused attn/out-proj/add/LN.
    m1 = params["mha1"]
    qkv = linear(x.reshape(N * T, D), m1["wqkv"], m1["bqkv"]
                 ).reshape(N, T, 3 * D)
    x1 = attn_block(qkv, 0, qkv, 1, 2, look_ahead_mask, causal_self_attention,
                    x, m1["wo"], m1["bo"], params["ln1_g"], params["ln1_b"], H)

    # 2) cross-attention over encoder output.
    # TODO(synk): the q projection could be folded into the cross-attn kernel
    # to save one pallas_call and an (N,T,D) HBM round trip for decode shapes.
    m2 = params["mha2"]
    q2 = linear(x1.reshape(N * T, D), m2["wq"], m2["bq"]).reshape(N, T, D)
    kv2 = linear(enc_output.reshape(N * Te, D), m2["wkv"], m2["bkv"]
                 ).reshape(N, Te, 2 * D)
    x2 = attn_block(q2, 0, kv2, 0, 1, padding_mask, False,
                    x1, m2["wo"], m2["bo"], params["ln2_g"], params["ln2_b"], H)

    # 3) fused FFN (Linear -> ReLU -> Linear) + residual + LayerNorm.
    out = ffn_block(x2.reshape(N * T, D), params["ff_w1"], params["ff_b1"],
                    params["ff_w2"], params["ff_b2"],
                    params["ln3_g"], params["ln3_b"]).reshape(N, T, D)
    return out


# ----------------------------------------------------------------------------
# Parameter init (canonical f32, PyTorch-equivalent) and host-side prep
# (bf16 weights + 1/sqrt(head_dim) folded into Wq / bq) for the kernels.
# ----------------------------------------------------------------------------
def init_decoder_params(key, model_dim, num_heads, feed_forward_dim):
    keys = jax.random.split(key, 14)
    s = 0.02
    D, FF = model_dim, feed_forward_dim

    def nrm(k, shape):
        return s * jax.random.normal(k, shape, jnp.float32)

    return {
        "num_heads": num_heads,
        "mha1": {
            "wqkv": nrm(keys[0], (D, 3 * D)),   # [Wq | Wk | Wv]
            "bqkv": nrm(keys[1], (3 * D,)),
            "wo": nrm(keys[2], (D, D)),
            "bo": nrm(keys[3], (D,)),
        },
        "mha2": {
            "wq": nrm(keys[4], (D, D)),
            "bq": nrm(keys[5], (D,)),
            "wkv": nrm(keys[6], (D, 2 * D)),    # [Wk | Wv]
            "bkv": nrm(keys[7], (2 * D,)),
            "wo": nrm(keys[8], (D, D)),
            "bo": nrm(keys[9], (D,)),
        },
        "ff_w1": nrm(keys[10], (D, FF)),
        "ff_b1": nrm(keys[11], (FF,)),
        "ff_w2": nrm(keys[12], (FF, D)),
        "ff_b2": nrm(keys[13], (D,)),
        "ln1_g": jnp.ones((D,), jnp.float32),
        "ln1_b": jnp.zeros((D,), jnp.float32),
        "ln2_g": jnp.ones((D,), jnp.float32),
        "ln2_b": jnp.zeros((D,), jnp.float32),
        "ln3_g": jnp.ones((D,), jnp.float32),
        "ln3_b": jnp.zeros((D,), jnp.float32),
    }


def prepare_decoder_params(params, matmul_dtype=MATMUL_DTYPE):
    """Host-side prep: cast weight matrices to the MXU dtype and fold the
    1/sqrt(head_dim) softmax scale into the query projection."""
    D = params["mha1"]["wo"].shape[0]
    H = params["num_heads"]
    scale = 1.0 / math.sqrt(D // H)
    qscale3 = jnp.concatenate([jnp.full((D,), scale, jnp.float32),
                               jnp.ones((2 * D,), jnp.float32)])
    m1, m2 = params["mha1"], params["mha2"]
    return {
        "num_heads": H,
        "mha1": {
            "wqkv": (m1["wqkv"] * qscale3[None, :]).astype(matmul_dtype),
            "bqkv": m1["bqkv"] * qscale3,
            "wo": m1["wo"].astype(matmul_dtype),
            "bo": m1["bo"],
        },
        "mha2": {
            "wq": (m2["wq"] * scale).astype(matmul_dtype),
            "bq": m2["bq"] * scale,
            "wkv": m2["wkv"].astype(matmul_dtype),
            "bkv": m2["bkv"],
            "wo": m2["wo"].astype(matmul_dtype),
            "bo": m2["bo"],
        },
        "ff_w1": params["ff_w1"].astype(matmul_dtype),
        "ff_b1": params["ff_b1"],
        "ff_w2": params["ff_w2"].astype(matmul_dtype),
        "ff_b2": params["ff_b2"],
        "ln1_g": params["ln1_g"], "ln1_b": params["ln1_b"],
        "ln2_g": params["ln2_g"], "ln2_b": params["ln2_b"],
        "ln3_g": params["ln3_g"], "ln3_b": params["ln3_b"],
    }


# ----------------------------------------------------------------------------
# Pure-JAX f32 reference (mirrors the PyTorch DecoderBlock) for a sanity check
# ----------------------------------------------------------------------------
def _reference_decoder_block(params, x, enc, la_mask, pad_mask):
    H = params["num_heads"]
    D = x.shape[-1]

    def mha(q_in, kv_in, wq, bq, wk, bk, wv, bv, wo, bo, mask):
        N, Tq, _ = q_in.shape
        Tk = kv_in.shape[1]
        Dh = D // H
        q = (q_in @ wq + bq).reshape(N, Tq, H, Dh).transpose(0, 2, 1, 3)
        k = (kv_in @ wk + bk).reshape(N, Tk, H, Dh).transpose(0, 2, 1, 3)
        v = (kv_in @ wv + bv).reshape(N, Tk, H, Dh).transpose(0, 2, 1, 3)
        s = jnp.einsum("nhqd,nhkd->nhqk", q, k) / jnp.sqrt(jnp.float32(Dh))
        if mask is not None:
            s = s + mask * -1e9
        p = jax.nn.softmax(s, axis=-1)
        o = jnp.einsum("nhqk,nhkd->nhqd", p, v).transpose(0, 2, 1, 3)
        return o.reshape(N, Tq, D) @ wo + bo

    def ln(t, g, b, eps=LN_EPS):
        mu = t.mean(-1, keepdims=True)
        var = ((t - mu) ** 2).mean(-1, keepdims=True)
        return (t - mu) / jnp.sqrt(var + eps) * g + b

    m1 = params["mha1"]
    a1 = mha(x, x,
             m1["wqkv"][:, :D], m1["bqkv"][:D],
             m1["wqkv"][:, D:2 * D], m1["bqkv"][D:2 * D],
             m1["wqkv"][:, 2 * D:], m1["bqkv"][2 * D:],
             m1["wo"], m1["bo"], la_mask)
    x1 = ln(a1 + x, params["ln1_g"], params["ln1_b"])
    m2 = params["mha2"]
    a2 = mha(x1, enc,
             m2["wq"], m2["bq"],
             m2["wkv"][:, :D], m2["bkv"][:D],
             m2["wkv"][:, D:], m2["bkv"][D:],
             m2["wo"], m2["bo"], pad_mask)
    x2 = ln(a2 + x1, params["ln2_g"], params["ln2_b"])
    h = jnp.maximum(x2 @ params["ff_w1"] + params["ff_b1"], 0.0)
    f = h @ params["ff_w2"] + params["ff_b2"]
    return ln(f + x2, params["ln3_g"], params["ln3_b"])


# ----------------------------------------------------------------------------
# Main
# ----------------------------------------------------------------------------
if __name__ == "__main__":
    # batch, seq, model_dim, heads, ffn_dim (D multiple of 128 for lane tiling)
    N, T, D, H, FF = 2, 8, 128, 4, 256

    root = jax.random.PRNGKey(0)
    kp, kx, ke = jax.random.split(root, 3)

    params = init_decoder_params(kp, D, H, FF)       # canonical f32 params
    kparams = prepare_decoder_params(params)         # bf16 + folded q-scale
    x = jax.random.normal(kx, (N, T, D), jnp.float32)
    enc_output = jax.random.normal(ke, (N, T, D), jnp.float32)

    # causal look-ahead mask (reference path); the kernel generates it in-kernel
    look_ahead_mask = jnp.triu(jnp.ones((T, T), jnp.float32), k=1)
    padding_mask = None

    out = decoder_block(kparams, x, enc_output,
                        look_ahead_mask=None, padding_mask=padding_mask,
                        causal_self_attention=True)
    jax.block_until_ready(out)

    assert out.shape == (N, T, D) and out.dtype == jnp.float32
    assert bool(jnp.all(jnp.isfinite(out)))

    ref = _reference_decoder_block(params, x, enc_output, look_ahead_mask,
                                   padding_mask)
    max_err = float(jnp.max(jnp.abs(out - ref)))
    # bf16 MXU inputs + approx softmax reciprocal => relaxed parity tolerance.
    assert max_err < 5e-2, f"kernel/reference mismatch: max|diff|={max_err}"

    print("KERNEL_OK")
</pallas_src>

<mosaic_0001>
module attributes {stable_mosaic.version = 11 : i64} {
  func.func @_linear_kernel(%arg0: i32, %arg1: i32, %arg2: i32, %arg3: memref<16x128xf32, #tpu.memory_space<vmem>>, %arg4: memref<128x384xbf16, #tpu.memory_space<vmem>>, %arg5: memref<1x384xf32, #tpu.memory_space<vmem>>, %arg6: memref<16x384xf32, #tpu.memory_space<vmem>>, %arg7: memref<16x384xf32, #tpu.memory_space<vmem>>) attributes {dimension_semantics = [#tpu.dimension_semantics<parallel>, #tpu.dimension_semantics<parallel>, #tpu.dimension_semantics<arbitrary>], iteration_bounds = array<i64: 1, 1, 1>, scalar_prefetch = 0 : i64, scratch_operands = 1 : i64, tpu.core_type = #tpu.core_type<tc>, window_params = [{transform_indices = @transform_0, window_bounds = array<i64: 16, 128>}, {transform_indices = @transform_1, window_bounds = array<i64: 128, 384>}, {transform_indices = @transform_2, window_bounds = array<i64: 1, 384>}, {transform_indices = @transform_3, window_bounds = array<i64: 16, 384>}]} {
    %c0_i32 = arith.constant 0 : i32
    %0 = arith.cmpi eq, %arg2, %c0_i32 : i32
    %1 = arith.extui %0 : i1 to i32
    %c0_i32_0 = arith.constant 0 : i32
    %2 = arith.cmpi ne, %1, %c0_i32_0 : i32
    scf.if %2 {
      %cst_10 = arith.constant 0.000000e+00 : f32
      %13 = vector.broadcast %cst_10 : f32 to vector<16x384xf32>
      %c0_11 = arith.constant 0 : index
      %c0_12 = arith.constant 0 : index
      %14 = vector.load %arg7[%c0_11, %c0_12] : memref<16x384xf32, #tpu.memory_space<vmem>>, vector<16x384xf32>
      tpu.vector_store %arg7[%c0_11, %c0_12], %13 {strides = array<i32>} : memref<16x384xf32, #tpu.memory_space<vmem>>, vector<16x384xf32>,
    } else {
    }
    %c0 = arith.constant 0 : index
    %c0_1 = arith.constant 0 : index
    %3 = vector.load %arg7[%c0, %c0_1] : memref<16x384xf32, #tpu.memory_space<vmem>>, vector<16x384xf32>
    %c0_2 = arith.constant 0 : index
    %c0_3 = arith.constant 0 : index
    %4 = vector.load %arg3[%c0_2, %c0_3] : memref<16x128xf32, #tpu.memory_space<vmem>>, vector<16x128xf32>
    %5 = arith.truncf %4 : vector<16x128xf32> to vector<16x128xbf16>
    %c0_4 = arith.constant 0 : index
    %c0_5 = arith.constant 0 : index
    %6 = vector.load %arg4[%c0_4, %c0_5] : memref<128x384xbf16, #tpu.memory_space<vmem>>, vector<128x384xbf16>
    %cst = arith.constant dense<0.000000e+00> : vector<16x384xf32>
    %7 = tpu.matmul %5, %6, %cst {dimension_numbers = #tpu.dot_dimension_numbers<[1], [0], [0], [1], [0, 0, 1, 1], [], []>} : vector<16x128xbf16>, vector<128x384xbf16>, vector<16x384xf32> -> vector<16x384xf32>
    %8 = arith.addf %3, %7 : vector<16x384xf32>
    %c0_6 = arith.constant 0 : index
    %c0_7 = arith.constant 0 : index
    %9 = vector.load %arg7[%c0_6, %c0_7] : memref<16x384xf32, #tpu.memory_space<vmem>>, vector<16x384xf32>
    tpu.vector_store %arg7[%c0_6, %c0_7], %8 {strides = array<i32>} : memref<16x384xf32, #tpu.memory_space<vmem>>, vector<16x384xf32>,
    %c0_i32_8 = arith.constant 0 : i32
    %10 = arith.cmpi eq, %arg2, %c0_i32_8 : i32
    %11 = arith.extui %10 : i1 to i32
    %c0_i32_9 = arith.constant 0 : i32
    %12 = arith.cmpi ne, %11, %c0_i32_9 : i32
    scf.if %12 {
      %c0_10 = arith.constant 0 : index
      %c0_11 = arith.constant 0 : index
      %13 = vector.load %arg7[%c0_10, %c0_11] : memref<16x384xf32, #tpu.memory_space<vmem>>, vector<16x384xf32>
      %c0_12 = arith.constant 0 : index
      %c0_13 = arith.constant 0 : index
      %14 = vector.load %arg5[%c0_12, %c0_13] : memref<1x384xf32, #tpu.memory_space<vmem>>, vector<1x384xf32>
      %15 = vector.broadcast %14 : vector<1x384xf32> to vector<16x384xf32>
      %16 = arith.addf %13, %15 : vector<16x384xf32>
      %c0_14 = arith.constant 0 : index
      %c0_15 = arith.constant 0 : index
      %17 = vector.load %arg6[%c0_14, %c0_15] : memref<16x384xf32, #tpu.memory_space<vmem>>, vector<16x384xf32>
      tpu.vector_store %arg6[%c0_14, %c0_15], %16 {strides = array<i32>} : memref<16x384xf32, #tpu.memory_space<vmem>>, vector<16x384xf32>,
    } else {
    }
    return
  }
  func.func @transform_0(%arg0: i32, %arg1: i32, %arg2: i32) -> (i32, i32) {
    %c0_i32 = arith.constant 0 : i32
    return %arg0, %arg2 : i32, i32
  }
  func.func @transform_1(%arg0: i32, %arg1: i32, %arg2: i32) -> (i32, i32) {
    %c0_i32 = arith.constant 0 : i32
    return %arg2, %arg1 : i32, i32
  }
  func.func @transform_2(%arg0: i32, %arg1: i32, %arg2: i32) -> (i32, i32) {
    %c0_i32 = arith.constant 0 : i32
    %c0_i32_0 = arith.constant 0 : i32
    return %c0_i32, %arg1 : i32, i32
  }
  func.func @transform_3(%arg0: i32, %arg1: i32, %arg2: i32) -> (i32, i32) {
    %c0_i32 = arith.constant 0 : i32
    return %arg0, %arg1 : i32, i32
  }
}

</mosaic_0001>

<bundles_post_ra>
// kernel: tpu_custom_call.1
= control target key start
LH: loop header
LB: loop body
LE: loop exit
PB: predicated region body
PF: predicated region fallthrough
CT: control target
= control target key end

     0   :  { %8 = vsyncpa [#allocation4], 0  ;;  %s615_s0 = inlined_call_operand.hbm [shape: f32[16,128], index: 0, kind: input, shape index: {}]   ;;  %s616_s1 = inlined_call_operand.hbm [shape: bf16[128,384], index: 1, kind: input, shape index: {}]   ;;  %s617_s2 = inlined_call_operand.vmem [shape: f32[1,384], index: 2, kind: input, shape index: {}]   ;;  %s618_s3 = inlined_call_operand.hbm [shape: f32[16,384], index: 3, kind: output, shape index: {}]  }
   0x1   :  { %9 = vsyncpa [#allocation7], 0 }
   0x2   :  { %10 = vsyncpa [#allocation5], 0  ;;  %s544_s12 = smov [#allocation3]   ;;  %s472_s16 = scalar_lea.hbm %s615_s0, 256 }
   0x3   :  { %s16_s13 = sshll.u32 %s544_s12, 4  ;;  %p473_p0 = scmp.ne.s32.totalorder %s615_s0, %s472_s16  ;;  %s17_s13 = int_to_ptr.vmem [resolvable:$true] %s16_s13 }
   0x4   :  { %p476_p1 = scmp.lt.u32.totalorder %s472_s16, %s615_s0 }
   0x6   :  { %p478_p2 = pnand %p476_p1, %p473_p0 }
   0x8   :  { %481 = shalt.err (!%p478_p2)
}
   0x9   :  { %s482_s21 = scalar_lea.vmem %s17_s13, 256  ;;  %p487_p4 = scmp.lt.s32.totalorder %s17_s13, %s17_s13 }
   0xa   :  { %p483_p3 = scmp.ne.s32.totalorder %s17_s13, %s482_s21  ;;  %p488_p5 = scmp.lt.s32.totalorder %s482_s21, %s482_s21 }
   0xc   :  { %p489_p6 = por %p488_p5, %p487_p4 }
   0xe   :  { %p490_p7 = pnand %p489_p6, %p483_p3 }
  0x10   :  { %493 = shalt.err (!%p490_p7)
}
  0x11   :  { %s545_s22 = smov 128   ;;  %s546_s23 = smov 8  }
  0x12   :  { %22 = dma.hbm_to_vmem [thread:$0]  %s615_s0, 256, %s17_s13, [#allocation4], %s545_s22, %s545_s22, %s546_s23  }
  0x13   :  { %s547_s26 = smov [#allocation6]   ;;  %s494_s30 = scalar_lea.hbm %s616_s1, 3072 }
  0x14   :  { %s28_s27 = sshll.u32 %s547_s26, 4  ;;  %p495_p8 = scmp.ne.s32.totalorder %s616_s1, %s494_s30  ;;  %s29_s27 = int_to_ptr.vmem [resolvable:$true] %s28_s27 }
  0x15   :  { %p498_p9 = scmp.lt.u32.totalorder %s494_s30, %s616_s1 }
  0x17   :  { %p500_p10 = pnand %p498_p9, %p495_p8 }
  0x19   :  { %503 = shalt.err (!%p500_p10)
}
  0x1a   :  { %s504_s8 = scalar_lea.vmem %s29_s27, 3072  ;;  %p509_p12 = scmp.lt.s32.totalorder %s29_s27, %s29_s27 }
  0x1b   :  { %p505_p11 = scmp.ne.s32.totalorder %s29_s27, %s504_s8  ;;  %p510_p13 = scmp.lt.s32.totalorder %s504_s8, %s504_s8 }
  0x1d   :  { %p511_p0 = por %p510_p13, %p509_p12 }
  0x1f   :  { %p512_p1 = pnand %p511_p0, %p505_p11 }
  0x21   :  { %515 = shalt.err (!%p512_p1)
}
  0x22   :  { %s548_s0 = smov 192   ;;  %s549_s9 = smov 12  }
  0x23   :  { %34 = dma.hbm_to_vmem [thread:$0]  %s616_s1, 3072, %s29_s27, [#allocation7], %s548_s0, %s548_s0, %s549_s9  }
  0x24   :  { %538 = dma.done.wait [#allocation4], 256  }
  0x25   :  { %539 = vsyncadd [#allocation4], 4294967040 }
  0x26   :  { %540 = dma.done.wait [#allocation7], 3072  }
  0x27   :  { %541 = vsyncadd [#allocation7], 4294964224  ;;  %v550_v0 = vmov 0.0   ;;  %vm551_vm0 = vmmov 0   ;;  %v552_v1 = vmov 0   ;;  %v60_v25 = vld [vmem:[#allocation3] sm:$0xff]  ;;  %v330_v29 = vlaneseq }
  0x28   :  { %408 = vmatprep.subr.bf16.mxu1 %v550_v0  ;;  %424 = vmatprep.mubr.msk.bf16.mxu1 %vm551_vm0, %v550_v0  ;;  %v440_v2 = vld [vmem:[#allocation6 + $0x4] ss:$12 sps:$4 sm:$0xff]   ;;  %v442_v3 = vld [vmem:[#allocation6 + $0x8] ss:$12 sps:$4 sm:$0xff]   ;;  %v443_v4 = vld [vmem:[#allocation6] ss:$12 sps:$4 sm:$0xff]  }
  0x29   :  { %255 = vmatprep.mubr.bf16.mxu0 %v552_v1  ;;  %223 = vmatprep.subr.bf16.mxu0 %v440_v2  ;;  %v444_v5 = vld [vmem:[#allocation6 + $0x1c] ss:$12 sps:$4 sm:$0xff]   ;;  %v446_v6 = vld [vmem:[#allocation6 + $0x20] ss:$12 sps:$4 sm:$0xff]   ;;  %v447_v7 = vld [vmem:[#allocation6 + $0x18] ss:$12 sps:$4 sm:$0xff]  }
  0x2a   :  { %409 = vmatpush3.bf16.msra.mxu1 %v442_v3  ;;  %224 = vmatpush1.bf16.msra.mxu0 %v443_v4  ;;  %v448_v8 = vld [vmem:[#allocation6 + $0x34] ss:$12 sps:$4 sm:$0xff]   ;;  %v450_v9 = vld [vmem:[#allocation6 + $0x38] ss:$12 sps:$4 sm:$0xff]   ;;  %v451_v10 = vld [vmem:[#allocation6 + $0x30] ss:$12 sps:$4 sm:$0xff]  }
  0x2b   :  { %410 = vmatprep.subr.bf16.mxu1 %v550_v0  ;;  %225 = vmatprep.subr.bf16.mxu0 %v444_v5  ;;  %v452_v11 = vld [vmem:[#allocation6 + $0x4c] ss:$12 sps:$4 sm:$0xff]   ;;  %v454_v12 = vld [vmem:[#allocation6 + $0x50] ss:$12 sps:$4 sm:$0xff]   ;;  %v455_v13 = vld [vmem:[#allocation6 + $0x48] ss:$12 sps:$4 sm:$0xff]  }
  0x2c   :  { %v456_v14 = vld [vmem:[#allocation6 + $0x64] ss:$12 sps:$4 sm:$0xff]   ;;  %v458_v15 = vld [vmem:[#allocation6 + $0x68] ss:$12 sps:$4 sm:$0xff]   ;;  %v459_v16 = vld [vmem:[#allocation6 + $0x60] ss:$12 sps:$4 sm:$0xff]  }
  0x2d   :  { %v460_v17 = vld [vmem:[#allocation6 + $0x7c] ss:$12 sps:$4 sm:$0xff]   ;;  %v462_v18 = vld [vmem:[#allocation6 + $0x80] ss:$12 sps:$4 sm:$0xff]   ;;  %v463_v19 = vld [vmem:[#allocation6 + $0x78] ss:$12 sps:$4 sm:$0xff]  }
  0x2e   :  { %411 = vmatpush3.bf16.msra.mxu1 %v446_v6  ;;  %226 = vmatpush1.bf16.msra.mxu0 %v447_v7  ;;  %v464_v20 = vld [vmem:[#allocation6 + $0x94] ss:$12 sps:$4 sm:$0xff]   ;;  %v466_v21 = vld [vmem:[#allocation6 + $0x98] ss:$12 sps:$4 sm:$0xff]   ;;  %v467_v22 = vld [vmem:[#allocation6 + $0x90] ss:$12 sps:$4 sm:$0xff]  }
  0x2f   :  { %412 = vmatprep.subr.bf16.mxu1 %v550_v0  ;;  %227 = vmatprep.subr.bf16.mxu0 %v448_v8  ;;  %v468_v23 = vld [vmem:[#allocation6 + $0xac] ss:$12 sps:$4 sm:$0xff]   ;;  %v470_v24 = vld [vmem:[#allocation6 + $0xb0] ss:$12 sps:$4 sm:$0xff]   ;;  %v471_v27 = vld [vmem:[#allocation6 + $0xa8] ss:$12 sps:$4 sm:$0xff]  }
  0x30   :  { %v61_v26 = vld [vmem:[#allocation3 + $0x8] sm:$0xff]  ;;  %v331_v30 = vshrl.u32 %v330_v29, 7  ;;  %v328_v32 = vld [vmem:[%s617_s2] sm:$0x7]  ;;  %s553_s13 = smov [#allocation8]  }
  0x31   :  { %v62_v28 = vpack.c.bf16 %v61_v26, %v60_v25  ;;  %s362_s14 = sshll.u32 %s553_s13, 4  ;;  %s363_s14 = int_to_ptr.vmem [resolvable:$true] %s362_s14 }
  0x32   :  { %413 = vmatpush3.bf16.msra.mxu1 %v450_v9  ;;  %228 = vmatpush1.bf16.msra.mxu0 %v451_v10  ;;  %v340_v31 = vsub.s32 2, %v331_v30  ;;  %v332_v33 = vsub.s32 0, %v331_v30  ;;  %v336_v34 = vsub.s32 1, %v331_v30  ;;  %s516_s2 = scalar_lea.vmem %s363_s14, 768  ;;  %p521_p3 = scmp.lt.s32.totalorder %s363_s14, %s363_s14 }
  0x33   :  { %414 = vmatprep.subr.bf16.mxu1 %v550_v0  ;;  %229 = vmatprep.subr.bf16.mxu0 %v452_v11  ;;  %p517_p2 = scmp.ne.s32.totalorder %s363_s14, %s516_s2  ;;  %p522_p4 = scmp.lt.s32.totalorder %s516_s2, %s516_s2 }
  0x34   :  { %v341_v35 = vrot.slane %v328_v32, %v340_v31  ;;  %v333_v36 = vrot.slane %v328_v32, %v332_v33  ;;  %v337_v37 = vrot.slane %v328_v32, %v336_v34 }
  0x35   :  { %p523_p5 = por %p522_p4, %p521_p3 }
  0x36   :  { %415 = vmatpush3.bf16.msra.mxu1 %v454_v12  ;;  %230 = vmatpush1.bf16.msra.mxu0 %v455_v13 }
  0x37   :  { %416 = vmatprep.subr.bf16.mxu1 %v550_v0  ;;  %231 = vmatprep.subr.bf16.mxu0 %v456_v14  ;;  %p524_p6 = pnand %p523_p5, %p517_p2 }
  0x3a   :  { %417 = vmatpush3.bf16.msra.mxu1 %v458_v15  ;;  %232 = vmatpush1.bf16.msra.mxu0 %v459_v16 }
  0x3b   :  { %418 = vmatprep.subr.bf16.mxu1 %v550_v0  ;;  %233 = vmatprep.subr.bf16.mxu0 %v460_v17 }
  0x3e   :  { %419 = vmatpush3.bf16.msra.mxu1 %v462_v18  ;;  %234 = vmatpush1.bf16.msra.mxu0 %v463_v19 }
  0x3f   :  { %420 = vmatprep.subr.bf16.mxu1 %v550_v0  ;;  %235 = vmatprep.subr.bf16.mxu0 %v464_v20 }
  0x42   :  { %421 = vmatpush3.bf16.msra.mxu1 %v466_v21  ;;  %236 = vmatpush1.bf16.msra.mxu0 %v467_v22 }
  0x43   :  { %422 = vmatprep.subr.bf16.mxu1 %v550_v0  ;;  %237 = vmatprep.subr.bf16.mxu0 %v468_v23 }
  0x46   :  { %423 = vmatpush3.bf16.msra.mxu1 %v470_v24  ;;  %238 = vmatpush1.bf16.msra.mxu0 %v471_v27 }
  0x49   :  { %425 = vmatmul.mubr.bf16.vlgmr.msra.gmra.mrb[0].mxu1 %v62_v28  ;;  %256 = vmatmul.mubr.bf16.vlgmr.msra.gmra.mrb[0].mxu0 %v62_v28 }
 0x11c   :  { %v300_v38 = vpop.f32.mrb[0].mxu1  ;;  %v257_v40 = vpop.f32.mrb[0].mxu0 }
 0x11d   :  { %v347_v39 = vadd.f32 %v341_v35, %v300_v38  ;;  %v426_v41 = vpop.f32.mrb[1].mxu1  ;;  %v345_v42 = vadd.f32 %v333_v36, %v257_v40  ;;  %v259_v43 = vpop.f32.mrb[1].mxu0 }
 0x11e   :  { %v303_v44 = vpop.f32.mrb[2].mxu1  ;;  %v346_v45 = vadd.f32 %v337_v37, %v259_v43  ;;  %v261_v47 = vpop.f32.mrb[2].mxu0 }
 0x11f   :  { %353 = vst [vmem:[#allocation8 + $0x10] sm:$0xff] %v347_v39  ;;  %v350_v46 = vadd.f32 %v341_v35, %v303_v44  ;;  %v427_v48 = vpop.f32.mrb[3].mxu1  ;;  %351 = vst [vmem:[#allocation8] sm:$0xff] %v345_v42  ;;  %v348_v49 = vadd.f32 %v333_v36, %v261_v47  ;;  %v263_v50 = vpop.f32.mrb[3].mxu0 }
 0x120   :  { %352 = vst [vmem:[#allocation8 + $0x8] sm:$0xff] %v346_v45  ;;  %v349_v51 = vadd.f32 %v337_v37, %v263_v50 }
 0x121   :  { %356 = vst [vmem:[#allocation8 + $0x28] sm:$0xff] %v350_v46  ;;  %354 = vst [vmem:[#allocation8 + $0x18] sm:$0xff] %v348_v49 }
 0x122   :  { %355 = vst [vmem:[#allocation8 + $0x20] sm:$0xff] %v349_v51 }
 0x123   :  { %527 = shalt.err (!%p524_p6)
}
 0x124   :  { %s528_s17 = scalar_lea.hbm %s618_s3, 768 }
 0x125   :  { %p529_p7 = scmp.ne.s32.totalorder %s618_s3, %s528_s17  ;;  %p532_p8 = scmp.lt.u32.totalorder %s528_s17, %s618_s3 }
 0x127   :  { %p534_p9 = pnand %p532_p8, %p529_p7 }
 0x129   :  { %537 = shalt.err (!%p534_p9)
}
 0x12a   :  { %s554_s22 = smov 384   ;;  %s555_s23 = smov 24  }
 0x12b   :  { %368 = dma.vmem_to_hbm [thread:$0]  %s363_s14, 768, %s618_s3, [#allocation5], %s554_s22, %s554_s22, %s555_s23  }
 0x12c   :  { %542 = dma.done.wait [#allocation5], 768  }
 0x12d   :  { %543 = vsyncadd [#allocation5], 4294966528 }
 0x12e   :  { %372 = vsyncpa [#allocation4], 1 }
 0x12f   :  { %373 = vsyncpa [#allocation7], 1 }
 0x130   :  { %374 = vsyncpa [#allocation5], 1 }

</bundles_post_ra>
